<compile_context>
chip_gen: v7x
topology: tpu7x:2x2x1
jax: 0.10.0
libtpu: 0.0.40
codegen_flags: <defaults>
</compile_context>

<pallas_src>
import jax
import jax.numpy as jnp
from jax import lax
from jax.experimental import pallas as pl
from jax.experimental.pallas import tpu as pltpu


# Phase/tap maps for ConvTranspose2d(k=4, s=2, p=1):
#   output row oh = 2*a + rh gets contributions from input rows ih = a + dy - 1
#   (dy in {0,1,2}, zero-padded outside) with kernel tap kh given below.
_KH_MAP = {0: {0: 3, 1: 1}, 1: {1: 2, 2: 0}}   # rh -> {dy: kh}
_KW_MAP = {0: {0: 3, 1: 1}, 1: {1: 2, 2: 0}}   # rw -> {dx: kw}


def _build_phase_weight(weight):
    """(Cin, Cout, 4, 4) PyTorch ConvTranspose2d weight -> (4*Cout, 9*Cin).

    Row block ph = rh*2 + rw holds the weights producing output phase (rh, rw);
    column block (dy*3 + dx) corresponds to the input offset (dy-1, dx-1).
    Offsets a phase does not use stay zero.
    """
    Cin, Cout, KH, KW = weight.shape
    w_all = jnp.zeros((4 * Cout, 9 * Cin), weight.dtype)
    for rh in range(2):
        for rw in range(2):
            ph = rh * 2 + rw
            for dy, kh in _KH_MAP[rh].items():
                for dx, kw in _KW_MAP[rw].items():
                    blk = weight[:, :, kh, kw].T            # (Cout, Cin)
                    r0 = ph * Cout
                    c0 = (dy * 3 + dx) * Cin
                    w_all = w_all.at[r0:r0 + Cout, c0:c0 + Cin].set(blk)
    return w_all


def _make_upconv_kernel(Cin, W, HW, PC, KC):
    def kernel(xf_ref, w_ref, b_ref, o_ref):
        # xf_ref: (1, Cin, FL)  height-padded, row-flattened input (+1 sentinel
        #                        element on each end of the flat axis)
        # w_ref : (PC, KC) = (4*Cout, 9*Cin) fused phase weight
        # b_ref : (PC, 1)
        # o_ref : (1, PC, HW)  phase-major, lane-dense output
        col = jax.lax.broadcasted_iota(jnp.int32, (1, HW), 1) % W
        not_first = col != 0          # mask for column offset -1 (dx == 0)
        not_last = col != (W - 1)     # mask for column offset +1 (dx == 2)

        # Build the (9*Cin, H*W) "patch" operand from 9 shifted lane windows of
        # the flat input (pure lane slices + cheap VPU masks; no reshapes).
        slabs = []
        for dy in range(3):
            for dx in range(3):
                start = dy * W + dx
                win = xf_ref[0, :, start:start + HW]         # (Cin, HW)
                if dx == 0:
                    win = jnp.where(not_first, win, 0.0)
                elif dx == 2:
                    win = jnp.where(not_last, win, 0.0)
                slabs.append(win)
        p = jnp.concatenate(slabs, axis=0)                   # (KC, HW)

        # One fused MXU matmul for all 4 output phases.
        acc = jnp.dot(w_ref[...], p, preferred_element_type=jnp.float32)
        acc = acc + b_ref[...]                               # (PC,1) bcast
        o_ref[0] = jnp.maximum(acc, 0.0)                     # ReLU (not last_block)
    return kernel


def upconv_block_pallas(x_nchw, weight, bias):
    """ConvTranspose2d(k=4, s=2, p=1) + ReLU.

    x_nchw : (N, Cin, H, W) float32
    weight : (Cin, Cout, 4, 4)  -- PyTorch ConvTranspose2d layout
    bias   : (Cout,)
    returns (N, Cout, 2H, 2W) float32
    """
    N, Cin, H, W = x_nchw.shape
    Cin_w, Cout, KH, KW = weight.shape
    assert Cin_w == Cin and (KH, KW) == (4, 4)

    HW = H * W
    FL = (H + 2) * W + 2          # height-padded rows flattened + 2 sentinels
    PC = 4 * Cout                 # 4 output phases x Cout
    KC = 9 * Cin                  # 3x3 input-offset window x Cin

    # --- minimal input glue: height zero-pad + flatten rows (+sentinels) ---
    xp = jnp.pad(x_nchw, ((0, 0), (0, 0), (1, 1), (0, 0)))       # (N,Cin,H+2,W)
    xf = jnp.pad(xp.reshape(N, Cin, (H + 2) * W),
                 ((0, 0), (0, 0), (1, 1)))                       # (N,Cin,FL)

    w_all = _build_phase_weight(weight)                          # (PC, KC)
    b_all = jnp.tile(bias, 4).reshape(PC, 1)                     # (PC, 1)

    kernel_fn = _make_upconv_kernel(Cin, W, HW, PC, KC)

    out_flat = pl.pallas_call(
        kernel_fn,
        out_shape=jax.ShapeDtypeStruct((N, PC, HW), jnp.float32),
        grid_spec=pltpu.PrefetchScalarGridSpec(
            num_scalar_prefetch=0,
            grid=(N,),
            in_specs=[
                pl.BlockSpec((1, Cin, FL), lambda n: (n, 0, 0)),
                pl.BlockSpec((PC, KC), lambda n: (0, 0)),
                pl.BlockSpec((PC, 1), lambda n: (0, 0)),
            ],
            out_specs=pl.BlockSpec((1, PC, HW), lambda n: (n, 0, 0)),
        ),
        compiler_params=pltpu.CompilerParams(
            dimension_semantics=("parallel",)),
    )(xf, w_all, b_all)

    # De-interleave phases back to NCHW (single small transpose; a full decoder
    # would keep the phase-major layout and skip this).
    out = out_flat.reshape(N, 2, 2, Cout, H, W)          # (n, rh, rw, co, a, b)
    out = jnp.transpose(out, (0, 3, 4, 1, 5, 2))         # (n, co, a, rh, b, rw)
    return out.reshape(N, Cout, 2 * H, 2 * W)


def upconv_block_reference(x_nchw, weight, bias):
    """Independent reference using lax.conv_general_dilated (= ConvTranspose2d)."""
    Cin, Cout, KH, KW = weight.shape
    w_oihw = jnp.transpose(weight[:, :, ::-1, ::-1], (1, 0, 2, 3))  # (Cout,Cin,KH,KW)
    y = lax.conv_general_dilated(
        x_nchw, w_oihw,
        window_strides=(1, 1),
        padding=[(2, 2), (2, 2)],
        lhs_dilation=(2, 2),
        dimension_numbers=('NCHW', 'OIHW', 'NCHW'))
    y = y + bias.reshape(1, Cout, 1, 1)
    return jnp.maximum(y, 0.0)


if __name__ == "__main__":
    key = jax.random.PRNGKey(0)
    k_x, k_w, k_b = jax.random.split(key, 3)

    N, Cin, Cout, H, W = 2, 4, 8, 16, 16                 # output: (2, 8, 32, 32)
    x = jax.random.normal(k_x, (N, Cin, H, W), jnp.float32)
    weight = 0.1 * jax.random.normal(k_w, (Cin, Cout, 4, 4), jnp.float32)
    bias = 0.1 * jax.random.normal(k_b, (Cout,), jnp.float32)

    out = jax.block_until_ready(upconv_block_pallas(x, weight, bias))
    ref = jax.block_until_ready(upconv_block_reference(x, weight, bias))

    assert out.shape == (N, Cout, 2 * H, 2 * W)
    assert jnp.allclose(out, ref, atol=1e-4, rtol=1e-4), "mismatch vs reference"

    print("KERNEL_OK")
</pallas_src>

<mosaic_0001>
module attributes {stable_mosaic.version = 11 : i64} {
  func.func @kernel(%arg0: i32, %arg1: memref<1x4x290xf32, #tpu.memory_space<vmem>>, %arg2: memref<32x36xf32, #tpu.memory_space<vmem>>, %arg3: memref<32x1xf32, #tpu.memory_space<vmem>>, %arg4: memref<1x32x256xf32, #tpu.memory_space<vmem>>) attributes {dimension_semantics = [#tpu.dimension_semantics<parallel>], iteration_bounds = array<i64: 2>, scalar_prefetch = 0 : i64, scratch_operands = 0 : i64, tpu.core_type = #tpu.core_type<tc>, window_params = [{transform_indices = @transform_0, window_bounds = array<i64: 1, 4, 290>}, {pipeline_mode = #tpu.pipeline_mode<synchronous>, transform_indices = @transform_1, window_bounds = array<i64: 32, 36>}, {pipeline_mode = #tpu.pipeline_mode<synchronous>, transform_indices = @transform_2, window_bounds = array<i64: 32, 1>}, {transform_indices = @transform_3, window_bounds = array<i64: 1, 32, 256>}]} {
    %0 = tpu.iota {dimensions = array<i32: 1>} : vector<1x256xi32>
    %c16_i32 = arith.constant 16 : i32
    %c0_i32 = arith.constant 0 : i32
    %1 = arith.cmpi eq, %c16_i32, %c0_i32 : i32
    %c1_i32 = arith.constant 1 : i32
    %2 = arith.select %1, %c1_i32, %c16_i32 : i32
    %3 = vector.broadcast %2 : i32 to vector<1x256xi32>
    %4 = arith.remsi %0, %3 : vector<1x256xi32>
    %c0_i32_0 = arith.constant 0 : i32
    %5 = vector.broadcast %c0_i32_0 : i32 to vector<1x256xi32>
    %6 = arith.cmpi ne, %4, %5 : vector<1x256xi32>
    %c0_i32_1 = arith.constant 0 : i32
    %7 = vector.broadcast %c0_i32_1 : i32 to vector<1x256xi32>
    %8 = arith.cmpi slt, %4, %7 : vector<1x256xi32>
    %c0_i32_2 = arith.constant 0 : i32
    %9 = arith.cmpi slt, %2, %c0_i32_2 : i32
    %10 = vector.broadcast %9 : i1 to vector<1x256xi1>
    %11 = vector.broadcast %10 : vector<1x256xi1> to vector<1x256xi1>
    %12 = arith.xori %8, %11 : vector<1x256xi1>
    %13 = arith.andi %12, %6 : vector<1x256xi1>
    %14 = vector.broadcast %2 : i32 to vector<1x256xi32>
    %15 = arith.addi %4, %14 : vector<1x256xi32>
    %16 = arith.select %13, %15, %4 : vector<1x256xi1>, vector<1x256xi32>
    %c0_i32_3 = arith.constant 0 : i32
    %17 = vector.broadcast %c0_i32_3 : i32 to vector<1x256xi32>
    %18 = arith.cmpi ne, %16, %17 : vector<1x256xi32>
    %c15_i32 = arith.constant 15 : i32
    %19 = vector.broadcast %c15_i32 : i32 to vector<1x256xi32>
    %20 = arith.cmpi ne, %16, %19 : vector<1x256xi32>
    %c0 = arith.constant 0 : index
    %c0_4 = arith.constant 0 : index
    %c0_5 = arith.constant 0 : index
    %21 = vector.load %arg1[%c0, %c0_4, %c0_5] : memref<1x4x290xf32, #tpu.memory_space<vmem>>, vector<1x4x256xf32>
    %22 = vector.shape_cast %21 : vector<1x4x256xf32> to vector<4x256xf32>
    %cst = arith.constant 0.000000e+00 : f32
    %23 = vector.shape_cast %18 : vector<1x256xi1> to vector<1x256xi1>
    %24 = vector.broadcast %23 : vector<1x256xi1> to vector<4x256xi1>
    %25 = vector.broadcast %cst : f32 to vector<4x256xf32>
    %26 = arith.select %24, %22, %25 : vector<4x256xi1>, vector<4x256xf32>
    %c0_6 = arith.constant 0 : index
    %c0_7 = arith.constant 0 : index
    %c1 = arith.constant 1 : index
    %27 = vector.load %arg1[%c0_6, %c0_7, %c1] : memref<1x4x290xf32, #tpu.memory_space<vmem>>, vector<1x4x256xf32>
    %28 = vector.shape_cast %27 : vector<1x4x256xf32> to vector<4x256xf32>
    %c0_8 = arith.constant 0 : index
    %c0_9 = arith.constant 0 : index
    %c2 = arith.constant 2 : index
    %29 = vector.load %arg1[%c0_8, %c0_9, %c2] : memref<1x4x290xf32, #tpu.memory_space<vmem>>, vector<1x4x256xf32>
    %30 = vector.shape_cast %29 : vector<1x4x256xf32> to vector<4x256xf32>
    %cst_10 = arith.constant 0.000000e+00 : f32
    %31 = vector.shape_cast %20 : vector<1x256xi1> to vector<1x256xi1>
    %32 = vector.broadcast %31 : vector<1x256xi1> to vector<4x256xi1>
    %33 = vector.broadcast %cst_10 : f32 to vector<4x256xf32>
    %34 = arith.select %32, %30, %33 : vector<4x256xi1>, vector<4x256xf32>
    %c0_11 = arith.constant 0 : index
    %c0_12 = arith.constant 0 : index
    %c16 = arith.constant 16 : index
    %35 = vector.load %arg1[%c0_11, %c0_12, %c16] : memref<1x4x290xf32, #tpu.memory_space<vmem>>, vector<1x4x256xf32>
    %36 = vector.shape_cast %35 : vector<1x4x256xf32> to vector<4x256xf32>
    %cst_13 = arith.constant 0.000000e+00 : f32
    %37 = vector.shape_cast %18 : vector<1x256xi1> to vector<1x256xi1>
    %38 = vector.broadcast %37 : vector<1x256xi1> to vector<4x256xi1>
    %39 = vector.broadcast %cst_13 : f32 to vector<4x256xf32>
    %40 = arith.select %38, %36, %39 : vector<4x256xi1>, vector<4x256xf32>
    %c0_14 = arith.constant 0 : index
    %c0_15 = arith.constant 0 : index
    %c17 = arith.constant 17 : index
    %41 = vector.load %arg1[%c0_14, %c0_15, %c17] : memref<1x4x290xf32, #tpu.memory_space<vmem>>, vector<1x4x256xf32>
    %42 = vector.shape_cast %41 : vector<1x4x256xf32> to vector<4x256xf32>
    %c0_16 = arith.constant 0 : index
    %c0_17 = arith.constant 0 : index
    %c18 = arith.constant 18 : index
    %43 = vector.load %arg1[%c0_16, %c0_17, %c18] : memref<1x4x290xf32, #tpu.memory_space<vmem>>, vector<1x4x256xf32>
    %44 = vector.shape_cast %43 : vector<1x4x256xf32> to vector<4x256xf32>
    %cst_18 = arith.constant 0.000000e+00 : f32
    %45 = vector.shape_cast %20 : vector<1x256xi1> to vector<1x256xi1>
    %46 = vector.broadcast %45 : vector<1x256xi1> to vector<4x256xi1>
    %47 = vector.broadcast %cst_18 : f32 to vector<4x256xf32>
    %48 = arith.select %46, %44, %47 : vector<4x256xi1>, vector<4x256xf32>
    %c0_19 = arith.constant 0 : index
    %c0_20 = arith.constant 0 : index
    %c32 = arith.constant 32 : index
    %49 = vector.load %arg1[%c0_19, %c0_20, %c32] : memref<1x4x290xf32, #tpu.memory_space<vmem>>, vector<1x4x256xf32>
    %50 = vector.shape_cast %49 : vector<1x4x256xf32> to vector<4x256xf32>
    %cst_21 = arith.constant 0.000000e+00 : f32
    %51 = vector.shape_cast %18 : vector<1x256xi1> to vector<1x256xi1>
    %52 = vector.broadcast %51 : vector<1x256xi1> to vector<4x256xi1>
    %53 = vector.broadcast %cst_21 : f32 to vector<4x256xf32>
    %54 = arith.select %52, %50, %53 : vector<4x256xi1>, vector<4x256xf32>
    %c0_22 = arith.constant 0 : index
    %c0_23 = arith.constant 0 : index
    %c33 = arith.constant 33 : index
    %55 = vector.load %arg1[%c0_22, %c0_23, %c33] : memref<1x4x290xf32, #tpu.memory_space<vmem>>, vector<1x4x256xf32>
    %56 = vector.shape_cast %55 : vector<1x4x256xf32> to vector<4x256xf32>
    %c0_24 = arith.constant 0 : index
    %c0_25 = arith.constant 0 : index
    %c34 = arith.constant 34 : index
    %57 = vector.load %arg1[%c0_24, %c0_25, %c34] : memref<1x4x290xf32, #tpu.memory_space<vmem>>, vector<1x4x256xf32>
    %58 = vector.shape_cast %57 : vector<1x4x256xf32> to vector<4x256xf32>
    %cst_26 = arith.constant 0.000000e+00 : f32
    %59 = vector.shape_cast %20 : vector<1x256xi1> to vector<1x256xi1>
    %60 = vector.broadcast %59 : vector<1x256xi1> to vector<4x256xi1>
    %61 = vector.broadcast %cst_26 : f32 to vector<4x256xf32>
    %62 = arith.select %60, %58, %61 : vector<4x256xi1>, vector<4x256xf32>
    %63 = tpu.concatenate %26, %28, %34, %40, %42, %48, %54, %56, %62 in 0 : vector<4x256xf32>, vector<4x256xf32>, vector<4x256xf32>, vector<4x256xf32>, vector<4x256xf32>, vector<4x256xf32>, vector<4x256xf32>, vector<4x256xf32>, vector<4x256xf32> -> vector<36x256xf32>
    %c0_27 = arith.constant 0 : index
    %c0_28 = arith.constant 0 : index
    %64 = vector.load %arg2[%c0_27, %c0_28] : memref<32x36xf32, #tpu.memory_space<vmem>>, vector<32x36xf32>
    %cst_29 = arith.constant dense<0.000000e+00> : vector<32x256xf32>
    %65 = tpu.matmul %64, %63, %cst_29 {dimension_numbers = #tpu.dot_dimension_numbers<[1], [0], [0], [1], [0, 0, 1, 1], [], []>} : vector<32x36xf32>, vector<36x256xf32>, vector<32x256xf32> -> vector<32x256xf32>
    %c0_30 = arith.constant 0 : index
    %c0_31 = arith.constant 0 : index
    %66 = vector.load %arg3[%c0_30, %c0_31] : memref<32x1xf32, #tpu.memory_space<vmem>>, vector<32x1xf32>
    %67 = vector.broadcast %66 : vector<32x1xf32> to vector<32x256xf32>
    %68 = arith.addf %65, %67 : vector<32x256xf32>
    %cst_32 = arith.constant 0.000000e+00 : f32
    %69 = vector.broadcast %cst_32 : f32 to vector<32x256xf32>
    %70 = arith.maximumf %68, %69 : vector<32x256xf32>
    %c0_33 = arith.constant 0 : index
    %c0_34 = arith.constant 0 : index
    %c0_35 = arith.constant 0 : index
    %71 = vector.load %arg4[%c0_33, %c0_34, %c0_35] : memref<1x32x256xf32, #tpu.memory_space<vmem>>, vector<1x32x256xf32>
    %72 = vector.shape_cast %71 : vector<1x32x256xf32> to vector<32x256xf32>
    %73 = vector.shape_cast %70 : vector<32x256xf32> to vector<1x32x256xf32>
    tpu.vector_store %arg4[%c0_33, %c0_34, %c0_35], %73 {strides = array<i32>} : memref<1x32x256xf32, #tpu.memory_space<vmem>>, vector<1x32x256xf32>,
    return
  }
  func.func @transform_0(%arg0: i32) -> (i32, i32, i32) {
    %c0_i32 = arith.constant 0 : i32
    %c0_i32_0 = arith.constant 0 : i32
    %c0_i32_1 = arith.constant 0 : i32
    return %arg0, %c0_i32, %c0_i32_0 : i32, i32, i32
  }
  func.func @transform_1(%arg0: i32) -> (i32, i32) {
    %c0_i32 = arith.constant 0 : i32
    %c0_i32_0 = arith.constant 0 : i32
    %c0_i32_1 = arith.constant 0 : i32
    return %c0_i32, %c0_i32_0 : i32, i32
  }
  func.func @transform_2(%arg0: i32) -> (i32, i32) {
    %c0_i32 = arith.constant 0 : i32
    %c0_i32_0 = arith.constant 0 : i32
    %c0_i32_1 = arith.constant 0 : i32
    return %c0_i32, %c0_i32_0 : i32, i32
  }
  func.func @transform_3(%arg0: i32) -> (i32, i32, i32) {
    %c0_i32 = arith.constant 0 : i32
    %c0_i32_0 = arith.constant 0 : i32
    %c0_i32_1 = arith.constant 0 : i32
    return %arg0, %c0_i32, %c0_i32_0 : i32, i32, i32
  }
}

</mosaic_0001>

<bundles_post_ra>
// kernel: tpu_custom_call.1
= control target key start
LH: loop header
LB: loop body
LE: loop exit
PB: predicated region body
PF: predicated region fallthrough
CT: control target
= control target key end

     0   :  { %8 = vsyncpa [#allocation3], 0  ;;  %s1126_s0 = inlined_call_operand.hbm [shape: f32[2,4,290], index: 0, kind: input, shape index: {}]   ;;  %s1127_s1 = inlined_call_operand.vmem [shape: f32[32,36], index: 1, kind: input, shape index: {}]   ;;  %s1128_s2 = inlined_call_operand.vmem [shape: f32[32,1], index: 2, kind: input, shape index: {}]   ;;  %s1129_s3 = inlined_call_operand.hbm [shape: f32[2,32,256], index: 3, kind: output, shape index: {}]  }
   0x1   :  { %10 = vsyncpa [#allocation3 + $0x1], 0 }
   0x2   :  { %11 = vsyncpa [#allocation4], 0 }
   0x3   :  { %13 = vsyncpa [#allocation4 + $0x1], 0  ;;  %s859_s12 = smov 0   ;;  %s861_s13 = smov 0  }
   0x4   :  { %s863_s14 = smov 0   ;;  %s865_s15 = smov 0  }
   0x5 LB: > { %s880_s16 = sadd.s32 4294967295, %s823_s15   ;;  %s594_s17 = sadd.s32 4294967294, %s823_s15   ;;  %s823_s15 = sphi %s865_s15, %s1151_s15   ;;  %s819_s14 = sphi %s863_s14, %s1150_s14   ;;  %s815_s13 = sphi %s861_s13, %s1149_s13   ;;  %s811_s12 = sphi %s859_s12, %s1148_s12  }
   0x6   : > { %s884_s18 = sadd.s32 1, %s823_s15   ;;  %s26_s19 = sadd.s32 1, %s819_s14 }
   0x7   : > { %s23_s20 = ssub.s32 %s823_s15, %s884_s18  ;;  %p33_p0 = scmp.ne.s32.totalorder %s819_s14, %s815_s13 }
   0x8   : > { %p24_p1 = scmp.eq.s32.totalorder %s23_s20, 0  ;;  %p34_p2 = scmp.eq.s32.totalorder %s823_s15, 0 }
   0x9   : > { %p39_p3 = scmp.ne.s32.totalorder %s815_s13, %s811_s12  ;;  %p40_p4 = scmp.eq.s32.totalorder %s880_s16, 0 }
   0xa   : > { %s896_s21 = scalar_select %p24_p1, %s819_s14, %s26_s19  }
   0xb   : > { %p35_p5 = por %p34_p2, %p33_p0  ;;  %p898_p6 = por %p40_p4, %p39_p3 }
   0xc   : > { %p105_p7 = scmp.eq.s32.totalorder %s880_s16, 1  ;;  %p111_p8 = scmp.eq.s32.totalorder %s594_s17, 1 }
   0xd   : > { %p641_p10 = scmp.lt.s32.totalorder %s823_s15, 2  ;;  %s137_s25 = sand.u32 1, %s819_s14  }
   0xe   : > { %p905_p11 = por %p105_p7, %p33_p0  ;;  %p909_p12 = por %p111_p8, %p39_p3 }
   0xf   : > { %s627_s26 = smul.u32 192, %s823_s15  ;;  %p920_p13 = pnand %p641_p10, %p35_p5 }
  0x10   : > { %s1132_s23 = scalar_select %p905_p11, 1, 0 }
  0x11   : > { %s1133_s24 = scalar_select %p909_p12, 1, 0 }
  0x12   : > { %s626_s27 = smul.u32 12, %s137_s25  ;;  %s918_s30 = scalar_lea.hbm %s1126_s0, %s627_s26 }
  0x13   : > { %s138_s7 = scalar_lea.sflag [#allocation3], %s137_s25  ;;  %s727_s8 = scalar_lea.hbm %s918_s30, 192 }
  0x14   : > { %s141_s5 = scalar_lea.vmem [#allocation2], %s626_s27  ;;  %p728_p2 = scmp.ne.s32.totalorder %s918_s30, %s727_s8 }
  0x15   : > { %s149_s6 = sshll.u32 %s141_s5, 4  ;;  %p729_p3 = pneg %p920_p13  ;;  %s925_s6 = int_to_ptr.vmem [resolvable:$true] %s149_s6 }
  0x16   : > { %s732_s11 = scalar_lea.hbm %s1126_s0, 384  ;;  %p733_p7 = scmp.lt.u32.totalorder %s918_s30, %s1126_s0 }
  0x17   : > { %p730_p4 = pnand %p729_p3, %p728_p2  ;;  %p734_p8 = scmp.lt.u32.totalorder %s732_s11, %s727_s8 }
  0x18   : > { %p736_p9 = scmp.lt.u32.totalorder %s727_s8, %s918_s30 }
  0x19   : > { %p731_p5 = pneg %p730_p4  ;;  %p735_p10 = por %p734_p8, %p733_p7 }
  0x1b   : > { %p737_p0 = por %p736_p9, %p735_p10 }
  0x1d   : > { %p738_p1 = pnand %p737_p0, %p731_p5 }
  0x1f   : > { %741 = shalt.err (!%p738_p1)
}
  0x20   : > { %s742_s20 = scalar_lea.vmem %s925_s6, 192  ;;  %s825_s25 = smov [#allocation2]  }
  0x21   : > { %p743_p2 = scmp.ne.s32.totalorder %s925_s6, %s742_s20  ;;  %s747_s26 = sshll.u32 %s825_s25, 4  ;;  %s748_s26 = int_to_ptr.vmem [resolvable:$false] %s747_s26 }
  0x22   : > { %s749_s27 = scalar_lea.vmem %s748_s26, 384  ;;  %p750_p11 = scmp.lt.s32.totalorder %s925_s6, %s748_s26 }
  0x23   : > { %p745_p4 = pnand %p743_p2, %p729_p3  ;;  %p751_p7 = scmp.lt.s32.totalorder %s749_s27, %s742_s20 }
  0x25   : > { %p746_p12 = pneg %p745_p4  ;;  %p752_p8 = por %p751_p7, %p750_p11 }
  0x27   : > { %p753_p9 = pnand %p752_p8, %p746_p12 }
  0x29   : > { %756 = shalt.err (!%p753_p9)
}
  0x2a   : > { %636 = dma.hbm_to_vmem [thread:$0]  (!%p920_p13), %s918_s30, 192, %s925_s6, %s138_s7  }
  0x2b   : > { %p1135_p0 = scmp.lt.s32.totalorder %s823_s15, 3  ;;  %p1136_p1 = scmp.ge.s32.totalorder %s823_s15, 1 }
  0x2d   : > { %p155_p3 = pnand %p1136_p1, %p1135_p0 }
  0x2e   : > { %s958_s28 = sand.u32 (!%p155_p3), 1, %s815_s13  }
  0x2f   : > { %158 = sbr.rel (%p155_p3) target bundleno = 442 (0x1ba), region = 32  ;;  %s161_s5 = scalar_lea.sflag (!%p155_p3), [#allocation3], %s958_s28 }
  0x30   : > { %s628_s29 = smul.u32 (!%p155_p3), 12, %s958_s28 }
  0x32   : > { %s164_s8 = scalar_lea.vmem (!%p155_p3), [#allocation2], %s628_s29 }
  0x36   : > { %802 = dma.done.wait (%p898_p6), %s161_s5, 192  }
  0x37   : > { %804 = vsyncadd (%p898_p6), %s161_s5, 4294967104  ;;  %v966_v0 = vld [vmem:[%s164_s8] sm:$0xff]  ;;  %v228_v1 = vld [vmem:[%s164_s8 + $0x8] sm:$0xf]  ;;  %s826_s30 = smov 126   ;;  %s827_s4 = smov 112   ;;  %v187_v13 = vlaneseq }
  0x38   : > { %234 = vrot.lane.b32.xlu1 %v966_v0, %s826_s30  ;;  %247 = vrot.lane.b32.xlu0 %v966_v0, %s827_s4  ;;  %v972_v2 = vcombine.high %v966_v0, %v966_v0  ;;  %v300_v3 = vcombine.low %v228_v1, %v228_v1  ;;  %s828_s22 = smov 110   ;;  %s829_s6 = smov 127   ;;  %v299_v6 = vcombine.low %v966_v0, %v966_v0  ;;  %v833_v7 = vmov 0.0   ;;  %v359_v9 = vld [vmem:[%s1128_s2] sm:$0xff]  ;;  %v361_v10 = vld [vmem:[%s1128_s2 + $0x10] sm:$0xff] }
  0x39   : > { %s830_s7 = smov 96   ;;  %s831_s9 = smov 95   ;;  %466 = vmatprep.mubr.f32.mxu0 %v833_v7  ;;  %478 = vmatprep.mubr.f32.mxu1 %v833_v7  ;;  %v834_v8 = vmov 0   ;;  %v360_v11 = vld [vmem:[%s1128_s2 + $0x8] sm:$0xff]  ;;  %v362_v12 = vld [vmem:[%s1128_s2 + $0x18] sm:$0xff]  ;;  %v188_v14 = vand.u32 127, %v187_v13 }
  0x3a   : > { %v692_v4 = vpack.i.bf16 %v228_v1, %v972_v2  ;;  %v697_v5 = vpack.i.bf16 %v300_v3, %v966_v0  ;;  %s832_s10 = smov 111   ;;  %722 = vset.pattern.permute.xlu1 %v834_v8  ;;  %723 = vset.pattern.permute.xlu0 %v834_v8  ;;  %s835_s11 = smov 94   ;;  %vm253_vm0 = vcmask 916480   ;;  %vm240_vm4 = vcmask 1031168  }
  0x3b   : > { %v189_v15 = vadd.s32 128, %v188_v14  ;;  %v194_v18 = vand.u32 15, %v188_v14  ;;  %vm307_vm5 = vcmask 1039360   ;;  %vm346_vm6 = vcmask 1043456   ;;  %s611_s20 = sshll.u32 %s880_s16, 10  ;;  %s508_s27 = scalar_lea.sflag [#allocation4], %s958_s28 }
  0x3c   : > { %693 = vrot.lane.b32.xlu1 %v692_v4, %s826_s30  ;;  %688 = vrot.lane.b32.xlu0 %v692_v4, %s827_s4  ;;  %vm266_vm8 = vcmask 900096   ;;  %vm279_vm9 = vcmask 785408   ;;  %vm341_vm10 = vcmask 777216   ;;  %vm324_vm11 = vcmask 908288   ;;  %s1082_s26 = scalar_lea.hbm %s1129_s3, %s611_s20  ;;  %p1145_p11 = scmp.ne.s32.totalorder %s1132_s23, 0 }
  0x3d   : > { %v201_v19 = vand.u32 15, %v189_v15  ;;  %vm1001_vm2 = vcmp.ne.s32.totalorder %v194_v18, 0  ;;  %vm1019_vm7 = vcmp.ne.s32.totalorder %v194_v18, 15  ;;  %vm292_vm12 = vcmask 769024   ;;  %s836_s5 = smov [#allocation5]  }
  0x3e   : > { %v226_v45 = vsel %vm1001_vm2, %v966_v0, 0.0  ;;  %vm383_vm13 = vcmask 293888   ;;  %s761_s8 = sshll.u32 %s836_s5, 4  ;;  %s762_s8 = int_to_ptr.vmem [resolvable:$false] %s761_s8 }
  0x3f   : > { %vm997_vm1 = vcmp.ne.s32.totalorder %v201_v19, 0  ;;  %vm1005_vm3 = vcmp.ne.s32.totalorder %v201_v19, 15  ;;  %s763_s30 = scalar_lea.vmem %s762_s8, 2048 }
  0x40   : > { %703 = vrot.lane.b32.xlu1 %v692_v4, %s828_s22  ;;  %698 = vrot.lane.b32.xlu0 %v697_v5, %s829_s6  ;;  %v227_v38 = vsel %vm997_vm1, %v972_v2, 0.0 }
  0x44   : > { %260 = vrot.lane.b32.xlu1 %v966_v0, %s828_s22  ;;  %301 = vrot.lane.b32.xlu0 %v299_v6, %s829_s6 }
  0x48   : > { %273 = vrot.lane.b32.xlu1 %v966_v0, %s830_s7  ;;  %708 = vrot.lane.b32.xlu0 %v692_v4, %s830_s7 }
  0x4c   : > { %718 = vrot.lane.b32.xlu1 %v697_v5, %s831_s9  ;;  %713 = vrot.lane.b32.xlu0 %v692_v4, %s832_s10 }
  0x50   : > { %335 = vrot.lane.b32.xlu1 %v299_v6, %s831_s9  ;;  %318 = vrot.lane.b32.xlu0 %v966_v0, %s832_s10 }
  0x54   : > { %290 = vrot.lane.b32.xlu1 %v228_v1, %s835_s11  ;;  %288 = vrot.lane.b32.xlu0 %v972_v2, %s835_s11 }
  0x58   : > { %286 = vrot.lane.b32.xlu0 %v966_v0, %s835_s11  ;;  %365 = vperm.xlu1 %722, %v359_v9   ;;  %s599_s11 = sshll.u32 %s958_s28, 6 }
  0x59   : > { %s186_s17 = scalar_lea.vmem [#allocation5], %s599_s11 }
  0x5a   : > { %s521_s19 = sshll.u32 %s186_s17, 4  ;;  %s1077_s19 = int_to_ptr.vmem [resolvable:$true] %s521_s19 }
  0x5b   : > { %s757_s29 = scalar_lea.vmem %s1077_s19, 1024  ;;  %p764_p5 = scmp.lt.s32.totalorder %s1077_s19, %s762_s8 }
  0x5c   : > { %375 = vperm.xlu1 %722, %v361_v10   ;;  %370 = vperm.xlu0 %723, %v360_v11   ;;  %p758_p6 = scmp.ne.s32.totalorder %s1077_s19, %s757_s29  ;;  %p765_p10 = scmp.lt.s32.totalorder %s763_s30, %s757_s29 }
  0x5e   : > { %p759_p12 = pnand %p758_p6, %p1145_p11  ;;  %p766_p2 = por %p765_p10, %p764_p5 }
  0x60   : > { %380 = vperm.xlu1 %722, %v362_v12   ;;  %p760_p13 = pneg %p759_p12 }
  0x62   : > { %p767_p4 = pnand %p766_p2, %p760_p13 }
  0xaa   : > { %v235_v16 = vpop.permute.xlu1 %234  ;;  %v248_v17 = vpop.permute.xlu0 %247 }
  0xae   : > { %v694_v20 = vpop.permute.xlu1 %693  ;;  %v689_v21 = vpop.permute.xlu0 %688 }
  0xaf   : > { %v696_v24 = vunpack.i.h.bf16 %v694_v20  ;;  %v695_v25 = vunpack.i.l.bf16 %v694_v20  ;;  %v691_v26 = vunpack.i.h.bf16 %v689_v21  ;;  %v690_v27 = vunpack.i.l.bf16 %v689_v21 }
  0xb1   : > { %v254_v29 = vsel %vm253_vm0, %v248_v17, %v690_v27  ;;  %v255_v30 = vsel %vm253_vm0, %v690_v27, %v691_v26  ;;  %v242_v31 = vsel %vm240_vm4, %v695_v25, %v696_v24  ;;  %v241_v42 = vsel %vm240_vm4, %v235_v16, %v695_v25 }
  0xb2   : > { %v704_v32 = vpop.permute.xlu1 %703  ;;  %v699_v33 = vpop.permute.xlu0 %698  ;;  %v259_v34 = vsel %vm997_vm1, %v255_v30, 0.0  ;;  %v258_v35 = vsel %vm1001_vm2, %v254_v29, 0.0  ;;  %v246_v39 = vsel %vm1005_vm3, %v242_v31, 0.0  ;;  %v245_v54 = vsel %vm1019_vm7, %v241_v42, 0.0 }
  0xb3   : > { %v701_v36 = vunpack.i.h.bf16 %v699_v33  ;;  %v700_v37 = vunpack.i.l.bf16 %v699_v33  ;;  %v315_v41 = vrot.slane %v259_v34, 4  ;;  %v314_v43 = vrot.slane %v258_v35, 4  ;;  %v355_v34 = vld [vmem:[%s1127_s1] sm:$0xff]  ;;  %v357_v35 = vld [vmem:[%s1127_s1 + $0x10] sm:$0xff] }
  0xb4   : > { %v706_v46 = vunpack.i.h.bf16 %v704_v32  ;;  %v705_v47 = vunpack.i.l.bf16 %v704_v32 }
  0xb5   : > { %v309_v44 = vsel %vm307_vm5, %v700_v37, %v701_v36  ;;  %v350_v51 = vsel %vm346_vm6, %v246_v39, %v315_v41  ;;  %v349_v56 = vsel %vm346_vm6, %v245_v54, %v314_v43  ;;  %v356_v36 = vld [vmem:[%s1127_s1 + $0x8] sm:$0xff] }
  0xb6   : > { %v261_v48 = vpop.permute.xlu1 %260  ;;  %v302_v49 = vpop.permute.xlu0 %301  ;;  %v348_v50 = vsel %vm346_vm6, %v227_v38, %v309_v44  ;;  %v268_v58 = vsel %vm266_vm8, %v705_v47, %v706_v46 }
  0xb7   : > { %v308_v52 = vsel %vm307_vm5, %v302_v49, %v700_v37  ;;  %v612_v53 = vpack.c.bf16 %v350_v51, %v348_v50  ;;  %v267_v61 = vsel %vm266_vm8, %v261_v48, %v705_v47  ;;  %v272_v0 = vsel %vm1005_vm3, %v268_v58, 0.0  ;;  %v358_v37 = vld [vmem:[%s1127_s1 + $0x18] sm:$0xff] }
  0xb8   : > { %v347_v55 = vsel %vm346_vm6, %v226_v45, %v308_v52  ;;  %v271_v1 = vsel %vm1019_vm7, %v267_v61, 0.0  ;;  %v332_v11 = vrot.slane %v272_v0, 4 }
  0xb9   : > { %613 = vmatprep.subr.bf16.mxu0 %v612_v53  ;;  %620 = vmatprep.subr.bf16.mxu1 %v612_v53  ;;  %v614_v57 = vpack.c.bf16 %v349_v56, %v347_v55  ;;  %v331_v15 = vrot.slane %v271_v1, 4 }
  0xba   : > { %v274_v59 = vpop.permute.xlu1 %273  ;;  %v709_v60 = vpop.permute.xlu0 %708 }
  0xbb   : > { %v711_v62 = vunpack.i.h.bf16 %v709_v60  ;;  %v710_v63 = vunpack.i.l.bf16 %v709_v60  ;;  %615 = vmatpush1.bf16.msra.mxu0 %v614_v57  ;;  %623 = vmatpush1.bf16.msra.mxu1 %v614_v57 }
  0xbd   : > { %v281_v2 = vsel %vm279_vm9, %v710_v63, %v711_v62  ;;  %v280_v10 = vsel %vm279_vm9, %v274_v59, %v710_v63 }
  0xbe   : > { %v719_v3 = vpop.permute.xlu1 %718  ;;  %v714_v4 = vpop.permute.xlu0 %713  ;;  %v285_v14 = vsel %vm997_vm1, %v281_v2, 0.0  ;;  %v284_v20 = vsel %vm1001_vm2, %v280_v10, 0.0 }
  0xbf   : > { %v721_v5 = vunpack.i.h.bf16 %v719_v3  ;;  %v720_v6 = vunpack.i.l.bf16 %v719_v3  ;;  %v716_v8 = vunpack.i.h.bf16 %v714_v4  ;;  %v715_v9 = vunpack.i.l.bf16 %v714_v4 }
  0xc1   : > { %v343_v12 = vsel %vm341_vm10, %v720_v6, %v721_v5  ;;  %v326_v13 = vsel %vm324_vm11, %v715_v9, %v716_v8 }
  0xc2   : > { %v336_v16 = vpop.permute.xlu1 %335  ;;  %v319_v17 = vpop.permute.xlu0 %318  ;;  %v352_v18 = vsel %vm346_vm6, %v326_v13, %v332_v11  ;;  %v354_v19 = vsel %vm346_vm6, %v285_v14, %v343_v12 }
  0xc3   : > { %v342_v21 = vsel %vm341_vm10, %v336_v16, %v720_v6  ;;  %v325_v24 = vsel %vm324_vm11, %v319_v17, %v715_v9  ;;  %v616_v25 = vpack.c.bf16 %v354_v19, %v352_v18 }
  0xc4   : > { %v353_v26 = vsel %vm346_vm6, %v284_v20, %v342_v21  ;;  %v351_v22 = vsel %vm346_vm6, %v325_v24, %v331_v15 }
  0xc5   : > { %617 = vmatprep.subr.bf16.mxu0 %v616_v25  ;;  %621 = vmatprep.subr.bf16.mxu1 %v616_v25  ;;  %v618_v27 = vpack.c.bf16 %v353_v26, %v351_v22 }
  0xc6   : > { %v291_v29 = vpop.permute.xlu1 %290  ;;  %v289_v30 = vpop.permute.xlu0 %288 }
  0xc7   : > { %v294_v31 = vsel %vm292_vm12, %v289_v30, %v291_v29  ;;  %619 = vmatpush1.bf16.msra.mxu0 %v618_v27  ;;  %624 = vmatpush1.bf16.msra.mxu1 %v618_v27 }
  0xc8   : > { %v298_v23 = vsel %vm1005_vm3, %v294_v31, 0.0 }
  0xc9   : > { %600 = vmatprep.subr.msk.mxu0 %vm346_vm6, %v298_v23  ;;  %622 = vmatprep.subr.msk.mxu1 %vm346_vm6, %v298_v23 }
  0xca   : > { %v287_v32 = vpop.permute.xlu0 %286 }
  0xcb   : > { %v293_v33 = vsel %vm292_vm12, %v287_v32, %v289_v30 }
  0xcc   : > { %v297_v28 = vsel %vm1019_vm7, %v293_v33, 0.0 }
  0xcd   : > { %601 = vmatpush1.msk.msra.mxu0 %vm346_vm6, %v297_v28  ;;  %625 = vmatpush1.msk.msra.mxu1 %vm346_vm6, %v297_v28 }
  0xce   : > { %602 = vmatmul.mubr.msk.f32.vlgmr.msra.gmra.mrb[0].mxu0 %vm383_vm13, %v355_v34  ;;  %604 = vmatmul.mubr.msk.f32.vlgmr.msra.gmra.mrb[0].mxu1 %vm383_vm13, %v357_v35 }
  0xcf   : > { %472 = vmatprep.mubr.f32.mxu0 %v833_v7  ;;  %484 = vmatprep.mubr.f32.mxu1 %v833_v7 }
  0xd2   : > { %603 = vmatmul.mubr.msk.f32.gmra.mrb[2].mxu0 %vm383_vm13, %v356_v36  ;;  %605 = vmatmul.mubr.msk.f32.gmra.mrb[2].mxu1 %vm383_vm13, %v358_v37 }
  0xd7   : > { %v366_v38 = vpop.permute.xlu1 %365 }
  0xdb   : > { %v376_v39 = vpop.permute.xlu1 %375  ;;  %v371_v47 = vpop.permute.xlu0 %370 }
  0xdf   : > { %v381_v48 = vpop.permute.xlu1 %380 }
 0x1a1   : > { %v468_v40 = vpop.f32.mrb[0].mxu0  ;;  %v480_v41 = vpop.f32.mrb[0].mxu1 }
 0x1a2   : > { %v469_v42 = vadd.f32 %v468_v40, %v366_v38  ;;  %v481_v43 = vadd.f32 %v480_v41, %v376_v39  ;;  %v470_v44 = vpop.f32.mrb[1].mxu0  ;;  %v482_v7 = vpop.f32.mrb[1].mxu1 }
 0x1a3   : > { %v471_v45 = vadd.f32 %v470_v44, %v366_v38  ;;  %v483_v46 = vadd.f32 %v482_v7, %v376_v39 }
 0x1a4   : > { %v491_v49 = vmax.f32 %v469_v42, 0.0  ;;  %v495_v50 = vmax.f32 %v481_v43, 0.0 }
 0x1a5   : > { %v492_v51 = vmax.f32 %v471_v45, 0.0  ;;  %v496_v52 = vmax.f32 %v483_v46, 0.0  ;;  %v474_v53 = vpop.f32.mrb[2].mxu0  ;;  %v486_v54 = vpop.f32.mrb[2].mxu1 }
 0x1a6   : > { %499 = vst [vmem:[%s186_s17] sm:$0xff] %v491_v49  ;;  %503 = vst [vmem:[%s186_s17 + $0x20] sm:$0xff] %v495_v50  ;;  %v475_v55 = vadd.f32 %v474_v53, %v371_v47  ;;  %v487_v56 = vadd.f32 %v486_v54, %v381_v48  ;;  %v476_v57 = vpop.f32.mrb[3].mxu0  ;;  %v488_v58 = vpop.f32.mrb[3].mxu1 }
 0x1a7   : > { %500 = vst [vmem:[%s186_s17 + $0x8] sm:$0xff] %v492_v51  ;;  %504 = vst [vmem:[%s186_s17 + $0x28] sm:$0xff] %v496_v52  ;;  %v477_v59 = vadd.f32 %v476_v57, %v371_v47  ;;  %v489_v60 = vadd.f32 %v488_v58, %v381_v48 }
 0x1a8   : > { %v493_v61 = vmax.f32 %v475_v55, 0.0  ;;  %v497_v62 = vmax.f32 %v487_v56, 0.0 }
 0x1a9   : > { %v494_v63 = vmax.f32 %v477_v59, 0.0  ;;  %v498_v0 = vmax.f32 %v489_v60, 0.0 }
 0x1aa   : > { %501 = vst [vmem:[%s186_s17 + $0x10] sm:$0xff] %v493_v61  ;;  %505 = vst [vmem:[%s186_s17 + $0x30] sm:$0xff] %v497_v62 }
 0x1ab   : > { %502 = vst [vmem:[%s186_s17 + $0x18] sm:$0xff] %v494_v63  ;;  %506 = vst [vmem:[%s186_s17 + $0x38] sm:$0xff] %v498_v0 }
 0x1ac   : > { %770 = shalt.err (!%p767_p4)
}
 0x1ad   : > { %s771_s4 = scalar_lea.hbm %s1082_s26, 1024  ;;  %s775_s7 = scalar_lea.hbm %s1129_s3, 2048 }
 0x1ae   : > { %p772_p7 = scmp.ne.s32.totalorder %s1082_s26, %s771_s4  ;;  %p776_p0 = scmp.lt.u32.totalorder %s1082_s26, %s1129_s3 }
 0x1af   : > { %p777_p1 = scmp.lt.u32.totalorder %s775_s7, %s771_s4  ;;  %p779_p6 = scmp.lt.u32.totalorder %s771_s4, %s1082_s26 }
 0x1b0   : > { %p773_p8 = pnand %p772_p7, %p1145_p11 }
 0x1b1   : > { %p778_p3 = por %p777_p1, %p776_p0 }
 0x1b2   : > { %p774_p9 = pneg %p773_p8 }
 0x1b3   : > { %p780_p12 = por %p779_p6, %p778_p3 }
 0x1b5   : > { %p781_p13 = pnand %p780_p12, %p774_p9 }
 0x1b7   : > { %784 = shalt.err (!%p781_p13)
}
 0x1b8   : > { %s837_s11 = smov 256   ;;  %s838_s17 = smov 16  }
 0x1b9   : > { %631 = dma.vmem_to_hbm [thread:$0]  (%p1145_p11), %s1077_s19, 1024, %s1082_s26, %s508_s27, %s837_s11, %s837_s11, %s838_s17  }
 0x1ba PF: > { %s536_s20 = sand.u32 1, %s811_s12   ;;  %p1146_p5 = scmp.ne.s32.totalorder %s1133_s24, 0 }
 0x1bb   : > { %p1147_p10 = scmp.ge.s32.totalorder %s823_s15, 2  ;;  %s537_s25 = scalar_lea.sflag [#allocation4], %s536_s20 }
 0x1bd   : > { %p638_p2 = pnand %p1147_p10, %p1146_p5 }
 0x1bf   : > { %806 = dma.done.wait (!%p638_p2), %s537_s25, 1024  }
 0x1c0   : > { %808 = vsyncadd (!%p638_p2), %s537_s25, 4294966272  ;;  %p16_p4 = scmp.ge.s32.totalorder %s884_s18, 4   ;;  %s1148_s12 = smov %s815_s13 }
 0x1c1   : > { %s1149_s13 = smov %s819_s14  ;;  %s1150_s14 = smov %s896_s21 }
 0x1c2   : > { %s1151_s15 = smov %s884_s18  ;;  %18 = sbr.rel (!%p16_p4) target bundleno = 5 (0x5), region = 77 }
 0x1c9   :  { %542 = vsyncpa [#allocation3], 1 }
 0x1ca   :  { %544 = vsyncpa [#allocation3 + $0x1], 1 }
 0x1cb   :  { %545 = vsyncpa [#allocation4], 1 }
 0x1cc   :  { %547 = vsyncpa [#allocation4 + $0x1], 1 }

</bundles_post_ra>
